<compile_context>
chip_gen: v7x
topology: tpu7x:2x2x1
jax: 0.10.0
libtpu: 0.0.40
codegen_flags: <defaults>
</compile_context>

<pallas_src>
import functools

import jax
import jax.numpy as jnp
from jax.experimental import pallas as pl
from jax.experimental.pallas import tpu as pltpu


def _round_up(n, m):
    return ((n + m - 1) // m) * m


def _classifier_kernel(patches_ref, w_emb_ref, b_emb_ref, w_head_ref,
                       b_head_ref, out_ref, *, bt, P):
    # ---- image_encoder: one tall patch-embedding matmul (bf16 in, f32 acc) ----
    emb = jnp.dot(patches_ref[...], w_emb_ref[...],
                  preferred_element_type=jnp.float32)           # (bt*P, Dp) f32
    emb = jax.nn.gelu(emb + b_emb_ref[...])                     # tanh approx (see TODO)

    # ---- per-image mean pool over patches on the VPU (no pooling matrix) ----
    # TODO(synk): if P is not a multiple of 8 (e.g. ViT P=196) this reshape may
    # force a relayout; an iota-built block-diagonal matmul is the fallback.
    feat = jnp.mean(emb.reshape(bt, P, emb.shape[-1]), axis=1)  # (bt, Dp) f32

    # ---- classification_head: L2-normalize (rsqrt on EUP) then Linear ----
    ss = jnp.sum(feat * feat, axis=-1, keepdims=True)
    feat = feat * jax.lax.rsqrt(ss + 1e-12)

    logits = jnp.dot(feat.astype(jnp.bfloat16), w_head_ref[...],
                     preferred_element_type=jnp.float32)        # (bt, NCp) f32
    out_ref[...] = (logits + b_head_ref[...]).astype(out_ref.dtype)


def _prepare_params(params):
    """Pad / cast weights once to MXU- and lane-friendly shapes.

    Hoisted out of the per-call forward path so the padded constants are built
    a single time.  Zero padding is numerically exact.
    """
    w_emb = jnp.asarray(params["w_emb"], jnp.float32)
    b_emb = jnp.asarray(params["b_emb"], jnp.float32).reshape(1, -1)
    w_head = jnp.asarray(params["w_head"], jnp.float32)
    b_head = jnp.asarray(params["b_head"], jnp.float32).reshape(1, -1)
    PD, D = w_emb.shape
    NC = w_head.shape[1]

    PDp = _round_up(PD, 128)
    Dp = _round_up(D, 128)
    NCp = 128 if NC <= 128 else _round_up(NC, 256)   # lane-dense store, MXU-wide N

    w_emb_p = jnp.zeros((PDp, Dp), jnp.bfloat16).at[:PD, :D].set(
        w_emb.astype(jnp.bfloat16))
    b_emb_p = jnp.zeros((1, Dp), jnp.float32).at[:, :D].set(b_emb)
    w_head_p = jnp.zeros((Dp, NCp), jnp.bfloat16).at[:D, :NC].set(
        w_head.astype(jnp.bfloat16))
    b_head_p = jnp.zeros((1, NCp), jnp.float32).at[:, :NC].set(b_head)
    return dict(w_emb=w_emb_p, b_emb=b_emb_p, w_head=w_head_p, b_head=b_head_p,
                PD=PD, D=D, NC=NC)


def _forward_impl(x, prepped, patch_size, bt_cap):
    B, C, H, W = x.shape
    ps = patch_size
    assert H % ps == 0 and W % ps == 0
    nh, nw = H // ps, W // ps
    P = nh * nw
    PD = C * ps * ps
    assert PD == prepped["PD"]
    PDp, Dp = prepped["w_emb"].shape
    NCp = prepped["w_head"].shape[1]
    NC = prepped["NC"]

    # Fewer, fatter batch slabs amortize per-grid-step overhead and raise MXU
    # M-utilization.  Non-divisible batches are zero-padded and sliced back.
    # TODO(synk): on v7x keep nb >= 2 even for tiny B so both TensorCores work.
    bt = min(B, bt_cap)
    B_pad = _round_up(B, bt)
    nb = B_pad // bt

    xb = x if B_pad == B else jnp.pad(
        x, ((0, B_pad - B), (0, 0), (0, 0), (0, 0)))

    # NCHW -> flat bf16 patches.  Input 0 is marked fusible so this producer
    # chain is folded into the pallas_call input DMA (no extra HBM pass).
    patches = xb.reshape(B_pad, C, nh, ps, nw, ps)
    patches = patches.transpose(0, 2, 4, 1, 3, 5).reshape(B_pad * P, PD)
    patches = patches.astype(jnp.bfloat16)
    if PDp != PD:
        patches = jnp.pad(patches, ((0, 0), (0, PDp - PD)))

    # VMEM budget: double-buffered operands + the f32 emb temporary, 2x margin.
    vmem_needed = 2 * (
        2 * bt * P * PDp * 2 +      # patch slab (bf16, double-buffered)
        2 * PDp * Dp * 2 +          # w_emb (bf16)
        2 * Dp * 4 +                # b_emb
        2 * Dp * NCp * 2 +          # w_head (bf16)
        2 * NCp * 4 +               # b_head
        2 * bt * NCp * 4 +          # output tile
        bt * P * Dp * 4)            # f32 emb temporary
    vmem_limit = int(min(max(vmem_needed, 32 * 1024 * 1024), 64 * 1024 * 1024))

    grid_spec = pltpu.PrefetchScalarGridSpec(
        num_scalar_prefetch=0,
        grid=(nb,),
        in_specs=[
            pl.BlockSpec((bt * P, PDp), lambda i: (i, 0)),   # per-slab patches
            # Weight/bias blocks are revisited with a constant index, so the
            # pipeline does not re-fetch them; pipeline_mode=pl.Buffered(1)
            # could additionally drop their second buffer if VMEM gets tight.
            pl.BlockSpec((PDp, Dp),     lambda i: (0, 0)),
            pl.BlockSpec((1, Dp),       lambda i: (0, 0)),
            pl.BlockSpec((Dp, NCp),     lambda i: (0, 0)),
            pl.BlockSpec((1, NCp),      lambda i: (0, 0)),
        ],
        out_specs=pl.BlockSpec((bt, NCp), lambda i: (i, 0)),
    )

    kernel = functools.partial(_classifier_kernel, bt=bt, P=P)
    logits_p = pl.pallas_call(
        kernel,
        out_shape=jax.ShapeDtypeStruct((B_pad, NCp), jnp.float32),
        grid_spec=grid_spec,
        compiler_params=pltpu.CompilerParams(
            dimension_semantics=("parallel",),
            allow_input_fusion=[True, False, False, False, False],
            vmem_limit_bytes=vmem_limit,
        ),
    )(patches, prepped["w_emb"], prepped["b_emb"],
      prepped["w_head"], prepped["b_head"])

    return logits_p[:B, :NC]


def build_image_classifier(params, patch_size):
    """Returns a jitted forward(x_nchw) -> (B, num_classes) logits closure."""
    prepped = _prepare_params(params)       # padded constants built once
    try:
        kind = jax.devices()[0].device_kind.lower()
    except Exception:  # pragma: no cover - defensive only
        kind = ""
    bt_cap = 16 if "7" in kind else 32       # v7x: smaller slab (64 MiB VMEM)

    def forward(x):
        return _forward_impl(x, prepped, patch_size, bt_cap)

    return jax.jit(forward)


def _reference_forward(x, params, patch_size):
    """Pure-JAX reference mirroring the kernel's dtype choices."""
    B, C, H, W = x.shape
    ps = patch_size
    nh, nw = H // ps, W // ps
    patches = x.reshape(B, C, nh, ps, nw, ps).transpose(0, 2, 4, 1, 3, 5)
    patches = patches.reshape(B, nh * nw, C * ps * ps).astype(jnp.bfloat16)
    w_emb = params["w_emb"].astype(jnp.bfloat16)
    emb = jnp.einsum("bpk,kd->bpd", patches, w_emb,
                     preferred_element_type=jnp.float32)
    emb = jax.nn.gelu(emb + params["b_emb"].reshape(1, 1, -1))
    feat = emb.mean(axis=1)
    feat = feat * jax.lax.rsqrt(jnp.sum(feat * feat, axis=-1, keepdims=True) + 1e-12)
    logits = jnp.dot(feat.astype(jnp.bfloat16),
                     params["w_head"].astype(jnp.bfloat16),
                     preferred_element_type=jnp.float32)
    return logits + params["b_head"].reshape(1, -1)


if __name__ == "__main__":
    key = jax.random.PRNGKey(0)
    B, C, H, W = 2, 4, 16, 16
    patch_size = 4
    D = 32            # encoder feature dim
    NC = 8            # number of classes
    PD = C * patch_size * patch_size

    k_x, k_we, k_be, k_wh, k_bh = jax.random.split(key, 5)
    x = jax.random.normal(k_x, (B, C, H, W), dtype=jnp.float32)

    # Deterministic synthetic parameters (weights stored (in, out); equivalent
    # to a torch Linear with weight.T).
    params = {
        "w_emb":  jax.random.normal(k_we, (PD, D), dtype=jnp.float32) * 0.05,
        "b_emb":  jax.random.normal(k_be, (1, D),  dtype=jnp.float32) * 0.01,
        "w_head": jax.random.normal(k_wh, (D, NC), dtype=jnp.float32) * 0.05,
        "b_head": jax.random.normal(k_bh, (1, NC), dtype=jnp.float32) * 0.01,
    }

    forward = build_image_classifier(params, patch_size)
    logits = jax.block_until_ready(forward(x))

    ref = _reference_forward(x, params, patch_size)
    assert logits.shape == (B, NC)
    assert jnp.allclose(logits, ref, atol=1e-3, rtol=1e-3), "mismatch vs reference"

    print("KERNEL_OK")
</pallas_src>

<mosaic_0001>
module attributes {stable_mosaic.version = 11 : i64} {
  func.func @_classifier_kernel(%arg0: i32, %arg1: memref<32x128xbf16, #tpu.memory_space<vmem>>, %arg2: memref<128x128xbf16, #tpu.memory_space<vmem>>, %arg3: memref<1x128xf32, #tpu.memory_space<vmem>>, %arg4: memref<128x128xbf16, #tpu.memory_space<vmem>>, %arg5: memref<1x128xf32, #tpu.memory_space<vmem>>, %arg6: memref<2x128xf32, #tpu.memory_space<vmem>>) attributes {dimension_semantics = [#tpu.dimension_semantics<parallel>], iteration_bounds = array<i64: 1>, scalar_prefetch = 0 : i64, scratch_operands = 0 : i64, tpu.core_type = #tpu.core_type<tc>, window_params = [{transform_indices = @transform_0, window_bounds = array<i64: 32, 128>}, {pipeline_mode = #tpu.pipeline_mode<synchronous>, transform_indices = @transform_1, window_bounds = array<i64: 128, 128>}, {pipeline_mode = #tpu.pipeline_mode<synchronous>, transform_indices = @transform_2, window_bounds = array<i64: 1, 128>}, {pipeline_mode = #tpu.pipeline_mode<synchronous>, transform_indices = @transform_3, window_bounds = array<i64: 128, 128>}, {pipeline_mode = #tpu.pipeline_mode<synchronous>, transform_indices = @transform_4, window_bounds = array<i64: 1, 128>}, {transform_indices = @transform_5, window_bounds = array<i64: 2, 128>}]} {
    %c0 = arith.constant 0 : index
    %c0_0 = arith.constant 0 : index
    %0 = vector.load %arg1[%c0, %c0_0] : memref<32x128xbf16, #tpu.memory_space<vmem>>, vector<32x128xbf16>
    %c0_1 = arith.constant 0 : index
    %c0_2 = arith.constant 0 : index
    %1 = vector.load %arg2[%c0_1, %c0_2] : memref<128x128xbf16, #tpu.memory_space<vmem>>, vector<128x128xbf16>
    %cst = arith.constant dense<0.000000e+00> : vector<32x128xf32>
    %2 = tpu.matmul %0, %1, %cst {dimension_numbers = #tpu.dot_dimension_numbers<[1], [0], [0], [1], [0, 0, 1, 1], [], []>} : vector<32x128xbf16>, vector<128x128xbf16>, vector<32x128xf32> -> vector<32x128xf32>
    %c0_3 = arith.constant 0 : index
    %c0_4 = arith.constant 0 : index
    %3 = vector.load %arg3[%c0_3, %c0_4] : memref<1x128xf32, #tpu.memory_space<vmem>>, vector<1x128xf32>
    %4 = vector.broadcast %3 : vector<1x128xf32> to vector<32x128xf32>
    %5 = arith.addf %2, %4 : vector<32x128xf32>
    %6 = arith.mulf %5, %5 : vector<32x128xf32>
    %7 = arith.mulf %5, %6 : vector<32x128xf32>
    %cst_5 = arith.constant 4.471500e-02 : f32
    %8 = vector.broadcast %cst_5 : f32 to vector<32x128xf32>
    %9 = arith.mulf %8, %7 : vector<32x128xf32>
    %10 = arith.addf %5, %9 : vector<32x128xf32>
    %cst_6 = arith.constant 0.797884583 : f32
    %11 = vector.broadcast %cst_6 : f32 to vector<32x128xf32>
    %12 = arith.mulf %11, %10 : vector<32x128xf32>
    %13 = math.tanh %12 : vector<32x128xf32>
    %cst_7 = arith.constant 1.000000e+00 : f32
    %14 = vector.broadcast %cst_7 : f32 to vector<32x128xf32>
    %15 = arith.addf %14, %13 : vector<32x128xf32>
    %cst_8 = arith.constant 5.000000e-01 : f32
    %16 = vector.broadcast %cst_8 : f32 to vector<32x128xf32>
    %17 = arith.mulf %16, %15 : vector<32x128xf32>
    %18 = arith.mulf %5, %17 : vector<32x128xf32>
    %19 = vector.shape_cast %18 : vector<32x128xf32> to vector<2x16x128xf32>
    %cst_9 = arith.constant dense<0.000000e+00> : vector<2x128xf32>
    %20 = vector.multi_reduction <add>, %19, %cst_9 [1] : vector<2x16x128xf32> to vector<2x128xf32>
    %cst_10 = arith.constant 1.600000e+01 : f32
    %21 = vector.broadcast %cst_10 : f32 to vector<2x128xf32>
    %22 = arith.divf %20, %21 : vector<2x128xf32>
    %23 = arith.mulf %22, %22 : vector<2x128xf32>
    %cst_11 = arith.constant dense<0.000000e+00> : vector<2xf32>
    %24 = vector.multi_reduction <add>, %23, %cst_11 [1] : vector<2x128xf32> to vector<2xf32>
    %25 = vector.shape_cast %24 : vector<2xf32> to vector<2x1xf32>
    %cst_12 = arith.constant 9.99999996E-13 : f32
    %26 = vector.broadcast %cst_12 : f32 to vector<2x1xf32>
    %27 = arith.addf %25, %26 : vector<2x1xf32>
    %28 = math.rsqrt %27 : vector<2x1xf32>
    %29 = vector.broadcast %28 : vector<2x1xf32> to vector<2x128xf32>
    %30 = arith.mulf %22, %29 : vector<2x128xf32>
    %31 = arith.truncf %30 : vector<2x128xf32> to vector<2x128xbf16>
    %c0_13 = arith.constant 0 : index
    %c0_14 = arith.constant 0 : index
    %32 = vector.load %arg4[%c0_13, %c0_14] : memref<128x128xbf16, #tpu.memory_space<vmem>>, vector<128x128xbf16>
    %cst_15 = arith.constant dense<0.000000e+00> : vector<2x128xf32>
    %33 = tpu.matmul %31, %32, %cst_15 {dimension_numbers = #tpu.dot_dimension_numbers<[1], [0], [0], [1], [0, 0, 1, 1], [], []>} : vector<2x128xbf16>, vector<128x128xbf16>, vector<2x128xf32> -> vector<2x128xf32>
    %c0_16 = arith.constant 0 : index
    %c0_17 = arith.constant 0 : index
    %34 = vector.load %arg5[%c0_16, %c0_17] : memref<1x128xf32, #tpu.memory_space<vmem>>, vector<1x128xf32>
    %35 = vector.broadcast %34 : vector<1x128xf32> to vector<2x128xf32>
    %36 = arith.addf %33, %35 : vector<2x128xf32>
    %c0_18 = arith.constant 0 : index
    %c0_19 = arith.constant 0 : index
    %37 = vector.load %arg6[%c0_18, %c0_19] : memref<2x128xf32, #tpu.memory_space<vmem>>, vector<2x128xf32>
    tpu.vector_store %arg6[%c0_18, %c0_19], %36 {strides = array<i32>} : memref<2x128xf32, #tpu.memory_space<vmem>>, vector<2x128xf32>,
    return
  }
  func.func @transform_0(%arg0: i32) -> (i32, i32) {
    %c0_i32 = arith.constant 0 : i32
    %c0_i32_0 = arith.constant 0 : i32
    return %arg0, %c0_i32 : i32, i32
  }
  func.func @transform_1(%arg0: i32) -> (i32, i32) {
    %c0_i32 = arith.constant 0 : i32
    %c0_i32_0 = arith.constant 0 : i32
    %c0_i32_1 = arith.constant 0 : i32
    return %c0_i32, %c0_i32_0 : i32, i32
  }
  func.func @transform_2(%arg0: i32) -> (i32, i32) {
    %c0_i32 = arith.constant 0 : i32
    %c0_i32_0 = arith.constant 0 : i32
    %c0_i32_1 = arith.constant 0 : i32
    return %c0_i32, %c0_i32_0 : i32, i32
  }
  func.func @transform_3(%arg0: i32) -> (i32, i32) {
    %c0_i32 = arith.constant 0 : i32
    %c0_i32_0 = arith.constant 0 : i32
    %c0_i32_1 = arith.constant 0 : i32
    return %c0_i32, %c0_i32_0 : i32, i32
  }
  func.func @transform_4(%arg0: i32) -> (i32, i32) {
    %c0_i32 = arith.constant 0 : i32
    %c0_i32_0 = arith.constant 0 : i32
    %c0_i32_1 = arith.constant 0 : i32
    return %c0_i32, %c0_i32_0 : i32, i32
  }
  func.func @transform_5(%arg0: i32) -> (i32, i32) {
    %c0_i32 = arith.constant 0 : i32
    %c0_i32_0 = arith.constant 0 : i32
    return %arg0, %c0_i32 : i32, i32
  }
}

</mosaic_0001>

<bundles_post_ra>
// kernel: forward.2
= control target key start
LH: loop header
LB: loop body
LE: loop exit
PB: predicated region body
PF: predicated region fallthrough
CT: control target
= control target key end

     0   :  { %s579_s0 = inlined_call_operand.vmem [shape: bf16[128,128], index: 0, kind: input, shape index: {}]   ;;  %s580_s1 = inlined_call_operand.vmem [shape: f32[1,128], index: 1, kind: input, shape index: {}]   ;;  %s581_s2 = inlined_call_operand.vmem [shape: bf16[128,128], index: 2, kind: input, shape index: {}]   ;;  %s582_s3 = inlined_call_operand.vmem [shape: f32[1,128], index: 3, kind: input, shape index: {}]   ;;  %s583_s4 = inlined_call_operand.vmem [shape: bf16[32,64], index: 4, kind: input, shape index: {}]   ;;  %s584_s5 = inlined_call_operand.<no memory space> [shape: bf16[], index: 5, kind: input, shape index: {}]   ;;  %s585_s6 = inlined_call_operand.hbm [shape: f32[2,128], index: 6, kind: output, shape index: {}]  }
   0x1   :  { %v11_v0 = vstv %s584_s5 }
   0x2   :  { %v12_v1 = vunpack.i.l.bf16 %v11_v0 }
   0x3   :  { %v118_v2 = vld [vmem:[%s579_s0] sm:$0xff]  ;;  %v119_v3 = vld [vmem:[%s579_s0 + $0x8] sm:$0xff]  ;;  %v39_v4 = vlaneseq  ;;  %v451_v5 = vmov 0.0  }
   0x4   :  { %372 = vmatprep.subr.bf16.mxu0 %v118_v2  ;;  %392 = vmatprep.subr.bf16.mxu1 %v451_v5  ;;  %v36_v6 = vld [vmem:[%s583_s4] sm:$0xff]   ;;  %v347_v10 = vld [vmem:[%s583_s4 + $0x8] sm:$0xff]  }
   0x5   :  { %373 = vmatpush3.bf16.msra.mxu0 %v118_v2  ;;  %v40_v7 = vand.u32 127, %v39_v4  ;;  %v37_v8 = vunpack.c.l.bf16 %v36_v6  ;;  %v58_v9 = vunpack.c.h.bf16 %v36_v6 }
   0x6   :  { %374 = vmatprep.subr.bf16.mxu0 %v119_v3 }
   0x7   :  { %16 = vsyncpa [#allocation8], 0  ;;  %v120_v11 = vld [vmem:[%s579_s0 + $0x10] sm:$0xff]  ;;  %vm42_vm0 = vcmp.lt.s32.totalorder %v40_v7, 64  ;;  %v80_v12 = vunpack.c.l.bf16 %v347_v10  ;;  %v102_v13 = vunpack.c.h.bf16 %v347_v10  ;;  %v121_v22 = vld [vmem:[%s579_s0 + $0x18] sm:$0xff]  ;;  %vm251_vm1 = vcmask 1041409  }
   0x8   :  { %v43_v14 = vsel %vm42_vm0, %v37_v8, %v12_v1  ;;  %v64_v15 = vsel %vm42_vm0, %v58_v9, %v12_v1  ;;  %v122_v23 = vld [vmem:[%s579_s0 + $0x20] sm:$0xff]  ;;  %v123_v25 = vld [vmem:[%s579_s0 + $0x28] sm:$0xff]  ;;  %v124_v26 = vld [vmem:[%s579_s0 + $0x30] sm:$0xff]  ;;  %vm254_vm2 = vcmask 1041408   ;;  %vm452_vm3 = vmmov 0  }
   0x9   :  { %375 = vmatpush3.bf16.msra.mxu0 %v119_v3  ;;  %v44_v16 = vpack.c.bf16 %v451_v5, %v43_v14  ;;  %v66_v17 = vpack.c.bf16 %v451_v5, %v64_v15  ;;  %v86_v18 = vsel %vm42_vm0, %v80_v12, %v12_v1  ;;  %v108_v19 = vsel %vm42_vm0, %v102_v13, %v12_v1  ;;  %v125_v27 = vld [vmem:[%s579_s0 + $0x38] sm:$0xff]  ;;  %v268_v29 = vld [vmem:[%s581_s2] sm:$0xff] }
   0xa   :  { %376 = vmatprep.subr.bf16.mxu0 %v120_v11  ;;  %v88_v20 = vpack.c.bf16 %v451_v5, %v86_v18  ;;  %v110_v21 = vpack.c.bf16 %v451_v5, %v108_v19  ;;  %393 = vmatpush3.bf16.msra.mxu1 %v268_v29  ;;  %v349_v30 = vld [vmem:[%s580_s1] ss:$0 sm:$0xff] }
   0xb   :  { %46 = vst [vmem:[#allocation9] sm:$0xf] %v44_v16  ;;  %68 = vst [vmem:[#allocation9 + $0x4] sm:$0xf] %v66_v17  ;;  %394 = vmatprep.subr.bf16.mxu1 %v451_v5  ;;  %408 = vmatprep.mubr.msk.bf16.mxu1 %vm452_vm3, %v451_v5 }
   0xc   :  { %90 = vst [vmem:[#allocation9 + $0x8] sm:$0xf] %v88_v20  ;;  %112 = vst [vmem:[#allocation9 + $0xc] sm:$0xf] %v110_v21 }
   0xd   :  { %377 = vmatpush3.bf16.msra.mxu0 %v120_v11 }
   0xe   :  { %378 = vmatprep.subr.bf16.mxu0 %v121_v22 }
  0x11   :  { %379 = vmatpush3.bf16.msra.mxu0 %v121_v22 }
  0x12   :  { %380 = vmatprep.subr.bf16.mxu0 %v122_v23  ;;  %v415_v24 = vld [vmem:[#allocation9] sm:$0xff]  }
  0x13   :  { %388 = vmatprep.mubr.bf16.mxu0 %v415_v24  ;;  %v416_v28 = vld [vmem:[#allocation9 + $0x8] sm:$0xff]  }
  0x15   :  { %381 = vmatpush3.bf16.msra.mxu0 %v122_v23 }
  0x16   :  { %382 = vmatprep.subr.bf16.mxu0 %v123_v25 }
  0x19   :  { %383 = vmatpush3.bf16.msra.mxu0 %v123_v25 }
  0x1a   :  { %384 = vmatprep.subr.bf16.mxu0 %v124_v26 }
  0x1d   :  { %385 = vmatpush3.bf16.msra.mxu0 %v124_v26 }
  0x1e   :  { %386 = vmatprep.subr.bf16.mxu0 %v125_v27 }
  0x21   :  { %387 = vmatpush3.bf16.msra.mxu0 %v125_v27 }
  0x24   :  { %389 = vmatmul.mubr.bf16.vlgmr.msra.gmra.mrb[0].mxu0 %v416_v28 }
  0xf7   :  { %v390_v31 = vpop.f32.mrb[0].mxu0 }
  0xf8   :  { %v188_v32 = vadd.f32 %v390_v31, %v349_v30  ;;  %v179_v33 = vpop.f32.mrb[1].mxu0 }
  0xf9   :  { %v180_v34 = vadd.f32 %v349_v30, %v179_v33  ;;  %v391_v35 = vpop.f32.mrb[2].mxu0  ;;  %v270_v33 = vld [vmem:[%s581_s2 + $0x10] sm:$0xff] }
  0xfa   :  { %v196_v36 = vmul.f32 %v188_v32, %v188_v32  ;;  %v191_v37 = vadd.f32 %v391_v35, %v349_v30  ;;  %v182_v38 = vpop.f32.mrb[3].mxu0  ;;  %v272_v35 = vld [vmem:[%s581_s2 + $0x20] sm:$0xff] }
  0xfb   :  { %v194_v39 = vmul.f32 %v180_v34, %v180_v34  ;;  %v183_v40 = vadd.f32 %v349_v30, %v182_v38  ;;  %v275_v38 = vld [vmem:[%s581_s2 + $0x38] sm:$0xff] }
  0xfc   :  { %v200_v41 = vmul.f32 %v196_v36, %v188_v32  ;;  %v197_v42 = vmul.f32 %v191_v37, %v191_v37  ;;  %v273_v36 = vld [vmem:[%s581_s2 + $0x28] sm:$0xff] }
  0xfd   :  { %v198_v43 = vmul.f32 %v194_v39, %v180_v34  ;;  %v195_v44 = vmul.f32 %v183_v40, %v183_v40 }
  0xfe   :  { %v204_v45 = vmul.f32 0.044715, %v200_v41  ;;  %v201_v46 = vmul.f32 %v197_v42, %v191_v37 }
  0xff   :  { %v202_v47 = vmul.f32 0.044715, %v198_v43  ;;  %v199_v48 = vmul.f32 %v195_v44, %v183_v40 }
 0x100   :  { %v208_v49 = vadd.f32 %v204_v45, %v188_v32  ;;  %v205_v50 = vmul.f32 0.044715, %v201_v46 }
 0x101   :  { %v206_v51 = vadd.f32 %v202_v47, %v180_v34  ;;  %v203_v52 = vmul.f32 0.044715, %v199_v48 }
 0x102   :  { %v212_v53 = vmul.f32 0.7978846, %v208_v49  ;;  %v209_v54 = vadd.f32 %v205_v50, %v191_v37 }
 0x103   :  { %v210_v55 = vmul.f32 0.7978846, %v206_v51  ;;  %v207_v56 = vadd.f32 %v203_v52, %v183_v40  ;;  %v352_v51 = vld [vmem:[%s582_s3] ss:$0 sm:$0xff] }
 0x104   :  { %417 = vtanh.f32 %v212_v53  ;;  %v213_v57 = vmul.f32 0.7978846, %v209_v54 }
 0x105   :  { %419 = vtanh.f32 %v210_v55  ;;  %v211_v58 = vmul.f32 0.7978846, %v207_v56 }
 0x106   :  { %421 = vtanh.f32 %v213_v57 }
 0x107   :  { %423 = vtanh.f32 %v211_v58 }
 0x10e   :  { %v418_v59 = vpop.eup %417 }
 0x10f   :  { %v420_v60 = vpop.eup %419  ;;  %v220_v61 = vadd.f32 1.0, %v418_v59 }
 0x110   :  { %v422_v62 = vpop.eup %421  ;;  %v218_v63 = vadd.f32 1.0, %v420_v60 }
 0x111   :  { %v424_v0 = vpop.eup %423  ;;  %v224_v1 = vmul.f32 0.5, %v220_v61  ;;  %v221_v2 = vadd.f32 1.0, %v422_v62 }
 0x112   :  { %v222_v3 = vmul.f32 0.5, %v218_v63  ;;  %v219_v4 = vadd.f32 1.0, %v424_v0 }
 0x113   :  { %v225_v6 = vmul.f32 0.5, %v221_v2  ;;  %v228_v8 = vmul.f32 %v224_v1, %v188_v32  ;;  %v269_v32 = vld [vmem:[%s581_s2 + $0x8] sm:$0xff] }
 0x114   :  { %v223_v7 = vmul.f32 0.5, %v219_v4  ;;  %v226_v10 = vmul.f32 %v222_v3, %v180_v34  ;;  %395 = vmatpush3.bf16.msra.mxu1 %v269_v32  ;;  %v271_v34 = vld [vmem:[%s581_s2 + $0x18] sm:$0xff] }
 0x115   :  { %v229_v9 = vmul.f32 %v225_v6, %v191_v37  ;;  %396 = vmatprep.subr.bf16.mxu1 %v451_v5  ;;  %v274_v37 = vld [vmem:[%s581_s2 + $0x30] sm:$0xff]  ;;  %s453_s2 = smov [#allocation7]  }
 0x116   :  { %v227_v11 = vmul.f32 %v223_v7, %v183_v40  ;;  %s338_s9 = sshll.u32 %s453_s2, 4  ;;  %s339_s9 = int_to_ptr.vmem [resolvable:$true] %s338_s9 }
 0x117   :  { %v237_v12 = vadd.f32 %v229_v9, %v228_v8  ;;  %s427_s10 = scalar_lea.vmem %s339_s9, 32  ;;  %p432_p1 = scmp.lt.s32.totalorder %s339_s9, %s339_s9 }
 0x118   :  { %v230_v13 = vadd.f32 %v227_v11, %v226_v10  ;;  %397 = vmatpush3.bf16.msra.mxu1 %v270_v33  ;;  %p428_p0 = scmp.ne.s32.totalorder %s339_s9, %s427_s10  ;;  %p433_p2 = scmp.lt.s32.totalorder %s427_s10, %s427_s10 }
 0x119   :  { %v238_v14 = vrot.slane %v237_v12, 4  ;;  %398 = vmatprep.subr.bf16.mxu1 %v451_v5 }
 0x11a   :  { %v231_v15 = vrot.slane %v230_v13, 4  ;;  %p434_p3 = por %p433_p2, %p432_p1 }
 0x11b   :  { %v239_v16 = vadd.f32 %v238_v14, %v237_v12 }
 0x11c   :  { %v232_v17 = vadd.f32 %v231_v15, %v230_v13  ;;  %399 = vmatpush3.bf16.msra.mxu1 %v271_v34  ;;  %p435_p4 = pnand %p434_p3, %p428_p0 }
 0x11d   :  { %v240_v18 = vrot.slane %v239_v16, 2  ;;  %400 = vmatprep.subr.bf16.mxu1 %v451_v5 }
 0x11e   :  { %v233_v19 = vrot.slane %v232_v17, 2 }
 0x11f   :  { %v241_v20 = vadd.f32 %v240_v18, %v239_v16 }
 0x120   :  { %v234_v21 = vadd.f32 %v233_v19, %v232_v17  ;;  %401 = vmatpush3.bf16.msra.mxu1 %v272_v35 }
 0x121   :  { %v242_v22 = vrot.slane %v241_v20, 1  ;;  %402 = vmatprep.subr.bf16.mxu1 %v451_v5 }
 0x122   :  { %v235_v23 = vrot.slane %v234_v21, 1 }
 0x123   :  { %v243_v24 = vadd.f32 %v242_v22, %v241_v20 }
 0x124   :  { %v236_v25 = vadd.f32 %v235_v23, %v234_v21  ;;  %403 = vmatpush3.bf16.msra.mxu1 %v273_v36 }
 0x125   :  { %v246_v26 = vmul.f32 0.0625, %v243_v24  ;;  %404 = vmatprep.subr.bf16.mxu1 %v451_v5 }
 0x126   :  { %v245_v27 = vmul.f32 0.0625, %v236_v25 }
 0x127   :  { %v248_v28 = vmul.f32 %v246_v26, %v246_v26 }
 0x128   :  { %v247_v29 = vmul.f32 %v245_v27, %v245_v27  ;;  %405 = vmatpush3.bf16.msra.mxu1 %v274_v37 }
 0x129   :  { %406 = vmatprep.subr.bf16.mxu1 %v451_v5 }
 0x12a   :  { %v252_v30 = vsel %vm251_vm1, %v248_v28, %v247_v29 }
 0x12b   :  { %v255_v31 = vsel %vm254_vm2, %v252_v30, 0.0 }
 0x12c   :  { %256 = vadd.xlane.f32.xlu0 %v255_v31  ;;  %407 = vmatpush3.bf16.msra.mxu1 %v275_v38 }
 0x1b9   :  { %v257_v39 = vpop.xlane.xlu0 %256 }
 0x1ba   :  { %v258_v40 = vadd.f32 1e-12, %v257_v39 }
 0x1bc   :  { %425 = vrsqrt.f32 %v258_v40 }
 0x1c6   :  { %v426_v41 = vpop.eup %425 }
 0x1c7   :  { %v261_v42 = vrot.slane %v426_v41, 1  ;;  %v264_v43 = vmul.f32 %v426_v41, %v245_v27 }
 0x1c9   :  { %v265_v44 = vmul.f32 %v261_v42, %v246_v26  ;;  %v266_v45 = vpack.c.bf16 %v264_v43, %v264_v43 }
 0x1cb   :  { %v267_v46 = vpack.c.bf16 %v265_v44, %v265_v44  ;;  %v285_v48 = vunpack.c.l.b16 %v266_v45 }
 0x1cd   :  { %v286_v47 = vunpack.c.l.b16 %v267_v46 }
 0x1cf   :  { %v287_v49 = vrot.slane %v286_v47, 7 }
 0x1d1   :  { %v288_v50 = vsel %vm251_vm1, %v287_v49, %v285_v48 }
 0x1d2   :  { %v289_v5 = vpack.c.b16 %v288_v50, %v288_v50 }
 0x1d4   :  { %409 = vmatmul.mubr.bf16.vlgmr.msra.gmra.mrb[0].mxu1 %v289_v5 }
 0x2a7   :  { %v325_v52 = vpop.f32.mrb[0].mxu1 }
 0x2a8   :  { %v326_v53 = vadd.f32 %v352_v51, %v325_v52  ;;  %v410_v54 = vpop.f32.mrb[1].mxu1 }
 0x2a9   :  { %v328_v55 = vpop.f32.mrb[2].mxu1 }
 0x2aa   :  { %331 = vst [vmem:[#allocation7] sm:$0x3] %v326_v53  ;;  %v411_v56 = vpop.f32.mrb[3].mxu1 }
 0x2ab   :  { %438 = shalt.err (!%p435_p4)
}
 0x2ac   :  { %s439_s3 = scalar_lea.hbm %s585_s6, 32 }
 0x2ad   :  { %p440_p5 = scmp.ne.s32.totalorder %s585_s6, %s439_s3  ;;  %p443_p6 = scmp.lt.u32.totalorder %s439_s3, %s585_s6 }
 0x2af   :  { %p445_p7 = pnand %p443_p6, %p440_p5 }
 0x2b1   :  { %448 = shalt.err (!%p445_p7)
}
 0x2b2   :  { %341 = dma.vmem_to_hbm [thread:$0]  %s339_s9, 32, %s585_s6, [#allocation8]  }
 0x2b3   :  { %449 = dma.done.wait [#allocation8], 32  }
 0x2b4   :  { %450 = vsyncadd [#allocation8], 4294967264 }
 0x2b5   :  { %345 = vsyncpa [#allocation8], 1 }

</bundles_post_ra>
